<compile_context>
chip_gen: v7x
topology: tpu7x:2x2x1
jax: 0.10.0
libtpu: 0.0.40
codegen_flags: <defaults>
</compile_context>

<pallas_src>
import functools

import jax
import jax.numpy as jnp
from jax.experimental import pallas as pl
from jax.experimental.pallas import tpu as pltpu

EPS = 1e-6  # torch.nn.PairwiseDistance default eps


def _lp_distance(diff, p):
    """Lp norm of `diff` along the last (lane) axis, keepdims=True. p is trace-time."""
    if p == 2.0:
        # One VPU multiply + one sqrt per element instead of two transcendentals.
        return jnp.sqrt(jnp.sum(diff * diff, axis=-1, keepdims=True))
    if p == 1.0:
        return jnp.sum(jnp.abs(diff), axis=-1, keepdims=True)
    # Arbitrary p: generic (transcendental) fallback on the EUP.
    return jnp.power(
        jnp.sum(jnp.power(jnp.abs(diff), p), axis=-1, keepdims=True), 1.0 / p)


def _pairwise_margin_kernel(y_ref, x1_ref, x2_ref, o_ref, *, p, m, a):
    # x1_ref, x2_ref: (tb, D) tiles in VMEM (native input dtype).
    # y_ref: (1,) f32 scalar in SMEM.  o_ref: (tb, 1) f32.
    x1 = x1_ref[...].astype(jnp.float32)
    x2 = x2_ref[...].astype(jnp.float32)
    diff = x1 - x2 + EPS                          # (tb, D) f32
    dist = _lp_distance(diff, p)                  # (tb, 1)  lane reduction
    y = y_ref[0]
    loss = y * (dist - m) + a
    o_ref[...] = jnp.maximum(loss, 0.0)           # ReLU


def _choose_batch_tile(B, D, itemsize):
    """Row-tile size: multiple of 8 sublanes, per-input tile <= ~2 MiB."""
    budget_bytes = 2 * 1024 * 1024
    tb = budget_bytes // max(1, D * itemsize)
    tb = (tb // 8) * 8
    tb = max(8, min(tb, 8192))
    if B <= tb:
        return B  # single tile covering the whole (small) batch
    return tb


def pairwise_margin_loss(x1, x2, y, *, a, m, Lp, batch_tile=None):
    """x1, x2: (B, D) float arrays (any float dtype); y: scalar. Returns (B,) f32 loss."""
    assert x1.shape == x2.shape and x1.ndim == 2
    B, D = x1.shape

    y_arr = jnp.asarray([y], dtype=jnp.float32)   # scalar label, lives in SMEM

    tb = batch_tile if batch_tile is not None else _choose_batch_tile(
        B, D, x1.dtype.itemsize)
    grid = (pl.cdiv(B, tb),)

    kernel = functools.partial(
        _pairwise_margin_kernel, p=float(Lp), m=float(m), a=float(a))

    out = pl.pallas_call(
        kernel,
        out_shape=jax.ShapeDtypeStruct((B, 1), jnp.float32),
        grid=grid,
        in_specs=[
            pl.BlockSpec(memory_space=pltpu.MemorySpace.SMEM),   # y (scalar)
            pl.BlockSpec((tb, D), lambda i: (i, 0)),             # x1 row tile
            pl.BlockSpec((tb, D), lambda i: (i, 0)),             # x2 row tile
        ],
        out_specs=pl.BlockSpec((tb, 1), lambda i: (i, 0)),       # per-row loss
        compiler_params=pltpu.CompilerParams(
            dimension_semantics=("parallel",)),                  # v7x: 2 TCs
    )(y_arr, x1, x2)
    return out[:, 0]


def _reference(x1, x2, y, *, a, m, Lp):
    x1 = x1.astype(jnp.float32)
    x2 = x2.astype(jnp.float32)
    d = jnp.power(jnp.sum(jnp.power(jnp.abs(x1 - x2 + EPS), Lp), axis=-1), 1.0 / Lp)
    return jnp.maximum(y * (d - m) + a, 0.0)


if __name__ == "__main__":
    key = jax.random.PRNGKey(0)
    a_param, m_param = 1.0, 0.5

    # Case 1: small shape from the module spec (B=8, D=32), f32, several p.
    k1, k2 = jax.random.split(key)
    x1 = jax.random.normal(k1, (8, 32), dtype=jnp.float32)
    x2 = jax.random.normal(k2, (8, 32), dtype=jnp.float32)
    for Lp in (2.0, 1.0, 3.0):
        out = jax.block_until_ready(
            pairwise_margin_loss(x1, x2, 1, a=a_param, m=m_param, Lp=Lp))
        ref = _reference(x1, x2, 1, a=a_param, m=m_param, Lp=Lp)
        assert out.shape == (8,)
        assert jnp.allclose(out, ref, atol=1e-5, rtol=1e-4)

    # Case 2: multi-tile grid (2 batch tiles of 128) + bf16 inputs, p=2, y=-1.
    k3, k4 = jax.random.split(k2)
    x1b = jax.random.normal(k3, (256, 64), dtype=jnp.bfloat16)
    x2b = jax.random.normal(k4, (256, 64), dtype=jnp.bfloat16)
    out = jax.block_until_ready(
        pairwise_margin_loss(x1b, x2b, -1, a=a_param, m=m_param, Lp=2.0,
                             batch_tile=128))
    ref = _reference(x1b, x2b, -1, a=a_param, m=m_param, Lp=2.0)
    assert out.shape == (256,)
    assert jnp.allclose(out, ref, atol=1e-4, rtol=1e-3)

    print("KERNEL_OK")
</pallas_src>

<mosaic_0001>
module attributes {stable_mosaic.version = 11 : i64} {
  func.func @_pairwise_margin_kernel(%arg0: i32, %arg1: memref<1xf32, #tpu.memory_space<smem>>, %arg2: memref<8x32xf32, #tpu.memory_space<vmem>>, %arg3: memref<8x32xf32, #tpu.memory_space<vmem>>, %arg4: memref<8x1xf32, #tpu.memory_space<vmem>>) attributes {dimension_semantics = [#tpu.dimension_semantics<parallel>], iteration_bounds = array<i64: 1>, scalar_prefetch = 0 : i64, scratch_operands = 0 : i64, tpu.core_type = #tpu.core_type<tc>, window_params = [{transform_indices = @transform_0, window_bounds = array<i64: 1>}, {transform_indices = @transform_1, window_bounds = array<i64: 8, 32>}, {transform_indices = @transform_2, window_bounds = array<i64: 8, 32>}, {transform_indices = @transform_3, window_bounds = array<i64: 8, 1>}]} {
    %c0 = arith.constant 0 : index
    %c0_0 = arith.constant 0 : index
    %0 = vector.load %arg2[%c0, %c0_0] : memref<8x32xf32, #tpu.memory_space<vmem>>, vector<8x32xf32>
    %c0_1 = arith.constant 0 : index
    %c0_2 = arith.constant 0 : index
    %1 = vector.load %arg3[%c0_1, %c0_2] : memref<8x32xf32, #tpu.memory_space<vmem>>, vector<8x32xf32>
    %2 = arith.subf %0, %1 : vector<8x32xf32>
    %cst = arith.constant 9.99999997E-7 : f32
    %3 = vector.broadcast %cst : f32 to vector<8x32xf32>
    %4 = arith.addf %2, %3 : vector<8x32xf32>
    %5 = arith.mulf %4, %4 : vector<8x32xf32>
    %cst_3 = arith.constant dense<0.000000e+00> : vector<8xf32>
    %6 = vector.multi_reduction <add>, %5, %cst_3 [1] : vector<8x32xf32> to vector<8xf32>
    %7 = vector.shape_cast %6 : vector<8xf32> to vector<8x1xf32>
    %8 = math.sqrt %7 : vector<8x1xf32>
    %c0_4 = arith.constant 0 : index
    %9 = memref.load %arg1[%c0_4] : memref<1xf32, #tpu.memory_space<smem>>
    %cst_5 = arith.constant 5.000000e-01 : f32
    %10 = vector.broadcast %cst_5 : f32 to vector<8x1xf32>
    %11 = arith.subf %8, %10 : vector<8x1xf32>
    %12 = vector.broadcast %9 : f32 to vector<8x1xf32>
    %13 = arith.mulf %12, %11 : vector<8x1xf32>
    %cst_6 = arith.constant 1.000000e+00 : f32
    %14 = vector.broadcast %cst_6 : f32 to vector<8x1xf32>
    %15 = arith.addf %13, %14 : vector<8x1xf32>
    %cst_7 = arith.constant 0.000000e+00 : f32
    %16 = vector.broadcast %cst_7 : f32 to vector<8x1xf32>
    %17 = arith.maximumf %15, %16 : vector<8x1xf32>
    %c0_8 = arith.constant 0 : index
    %c0_9 = arith.constant 0 : index
    %18 = vector.load %arg4[%c0_8, %c0_9] : memref<8x1xf32, #tpu.memory_space<vmem>>, vector<8x1xf32>
    tpu.vector_store %arg4[%c0_8, %c0_9], %17 {strides = array<i32>} : memref<8x1xf32, #tpu.memory_space<vmem>>, vector<8x1xf32>,
    return
  }
  func.func @transform_0(%arg0: i32) -> i32 {
    %c0_i32 = arith.constant 0 : i32
    %c0_i32_0 = arith.constant 0 : i32
    return %c0_i32 : i32
  }
  func.func @transform_1(%arg0: i32) -> (i32, i32) {
    %c0_i32 = arith.constant 0 : i32
    %c0_i32_0 = arith.constant 0 : i32
    return %arg0, %c0_i32 : i32, i32
  }
  func.func @transform_2(%arg0: i32) -> (i32, i32) {
    %c0_i32 = arith.constant 0 : i32
    %c0_i32_0 = arith.constant 0 : i32
    return %arg0, %c0_i32 : i32, i32
  }
  func.func @transform_3(%arg0: i32) -> (i32, i32) {
    %c0_i32 = arith.constant 0 : i32
    %c0_i32_0 = arith.constant 0 : i32
    return %arg0, %c0_i32 : i32, i32
  }
}

</mosaic_0001>

<bundles_post_ra>
// kernel: tpu_custom_call.1
= control target key start
LH: loop header
LB: loop body
LE: loop exit
PB: predicated region body
PF: predicated region fallthrough
CT: control target
= control target key end

     0   :  { %9 = vsyncpa [#allocation4], 0  ;;  %s174_s0 = inlined_call_operand.<no memory space> [shape: f32[1], index: 0, kind: input, shape index: {}]   ;;  %s175_s1 = inlined_call_operand.hbm [shape: f32[8,32], index: 1, kind: input, shape index: {}]   ;;  %s176_s2 = inlined_call_operand.hbm [shape: f32[8,32], index: 2, kind: input, shape index: {}]   ;;  %s177_s3 = inlined_call_operand.vmem [shape: f32[8,1], index: 3, kind: output, shape index: {}]  }
   0x1   :  { %10 = vsyncpa [#allocation6], 0  ;;  %s122_s12 = smov [#allocation3]   ;;  %s123_s14 = smov [#allocation5]  }
   0x2   :  { %s19_s13 = sshll.u32 %s122_s12, 4  ;;  %s29_s15 = sshll.u32 %s123_s14, 4  ;;  %s20_s13 = int_to_ptr.vmem [resolvable:$true] %s19_s13  ;;  %s30_s15 = int_to_ptr.vmem [resolvable:$true] %s29_s15 }
   0x3   :  { %s74_s18 = scalar_lea.hbm %s175_s1, 128 }
   0x4   :  { %p75_p0 = scmp.ne.s32.totalorder %s175_s1, %s74_s18  ;;  %p78_p1 = scmp.lt.u32.totalorder %s74_s18, %s175_s1 }
   0x6   :  { %p80_p2 = pnand %p78_p1, %p75_p0 }
   0x8   :  { %83 = shalt.err (!%p80_p2)
}
   0x9   :  { %s84_s23 = scalar_lea.vmem %s20_s13, 128  ;;  %p89_p4 = scmp.lt.s32.totalorder %s20_s13, %s20_s13 }
   0xa   :  { %p85_p3 = scmp.ne.s32.totalorder %s20_s13, %s84_s23  ;;  %p90_p5 = scmp.lt.s32.totalorder %s84_s23, %s84_s23 }
   0xc   :  { %p91_p6 = por %p90_p5, %p89_p4 }
   0xe   :  { %p92_p7 = pnand %p91_p6, %p85_p3 }
  0x10   :  { %95 = shalt.err (!%p92_p7)
}
  0x11   :  { %22 = dma.hbm_to_vmem [thread:$0]  %s175_s1, 128, %s20_s13, [#allocation4]  }
  0x12   :  { %s96_s28 = scalar_lea.hbm %s176_s2, 128 }
  0x13   :  { %p97_p8 = scmp.ne.s32.totalorder %s176_s2, %s96_s28  ;;  %p100_p9 = scmp.lt.u32.totalorder %s96_s28, %s176_s2 }
  0x15   :  { %p102_p10 = pnand %p100_p9, %p97_p8 }
  0x17   :  { %105 = shalt.err (!%p102_p10)
}
  0x18   :  { %s106_s6 = scalar_lea.vmem %s30_s15, 128  ;;  %p111_p12 = scmp.lt.s32.totalorder %s30_s15, %s30_s15 }
  0x19   :  { %p107_p11 = scmp.ne.s32.totalorder %s30_s15, %s106_s6  ;;  %p112_p13 = scmp.lt.s32.totalorder %s106_s6, %s106_s6 }
  0x1b   :  { %p113_p0 = por %p112_p13, %p111_p12 }
  0x1d   :  { %p114_p1 = pnand %p113_p0, %p107_p11 }
  0x1f   :  { %117 = shalt.err (!%p114_p1)
}
  0x20   :  { %32 = dma.hbm_to_vmem [thread:$0]  %s176_s2, 128, %s30_s15, [#allocation6]  }
  0x21   :  { %118 = dma.done.wait [#allocation4], 128  }
  0x22   :  { %119 = vsyncadd [#allocation4], 4294967168 }
  0x23   :  { %120 = dma.done.wait [#allocation6], 128  }
  0x24   :  { %121 = vsyncadd [#allocation6], 4294967168  ;;  %v39_v0 = vld [vmem:[#allocation3] sm:$0xff]  ;;  %v40_v1 = vld [vmem:[#allocation5] sm:$0xff]  ;;  %vm44_vm0 = vcmask 261120   ;;  %v57_v12 = vstv %s174_s0  ;;  %vm61_vm3 = vcmask 7168  }
  0x25   :  { %v41_v2 = vsub.f32 %v39_v0, %v40_v1 }
  0x27   :  { %v42_v3 = vadd.f32 1e-06, %v41_v2 }
  0x29   :  { %v43_v4 = vmul.f32 %v42_v3, %v42_v3 }
  0x2b   :  { %v45_v5 = vsel %vm44_vm0, %v43_v4, 0.0 }
  0x2c   :  { %46 = vadd.xlane.f32.xlu0 %v45_v5 }
  0xb9   :  { %v47_v6 = vpop.xlane.xlu0 %46 }
  0xba   :  { %72 = vrsqrt.f32 %v47_v6  ;;  %vm50_vm1 = vcmp.eq.f32.partialorder %v47_v6, inf  ;;  %v53_v9 = vand.u32 2147483648, %v47_v6  ;;  %vm52_vm2 = vcmp.eq.f32.partialorder %v47_v6, 0.0 }
  0xc4   :  { %v73_v7 = vpop.eup %72 }
  0xc5   :  { %v49_v8 = vmul.f32 %v73_v7, %v47_v6 }
  0xc7   :  { %v51_v10 = vsel %vm50_vm1, %v47_v6, %v49_v8 }
  0xc8   :  { %v54_v11 = vsel %vm52_vm2, %v53_v9, %v51_v10 }
  0xc9   :  { %v69_v13 = vadd.f32 -0.5, %v54_v11 }
  0xcb   :  { %v58_v14 = vmul.f32 %v69_v13, %v57_v12 }
  0xcd   :  { %v59_v15 = vadd.f32 1.0, %v58_v14 }
  0xcf   :  { %v60_v16 = vmax.f32 %v59_v15, 0.0 }
  0xd1   :  { %62 = vst.msk [vmem:[%s177_s3] sm:$0xff] %vm61_vm3, %v60_v16 }
  0xd2   :  { %67 = vsyncpa [#allocation4], 1 }
  0xd3   :  { %68 = vsyncpa [#allocation6], 1 }

</bundles_post_ra>
